<compile_context>
chip_gen: v7x
topology: tpu7x:2x2x1
jax: 0.10.0
libtpu: 0.0.40
codegen_flags: <defaults>
</compile_context>

<pallas_src>
import functools

import jax
import jax.numpy as jnp
import numpy as np
from jax.experimental import pallas as pl
from jax.experimental.pallas import tpu as pltpu


# ---------------------------------------------------------------------------
# Pallas kernel: one batch element per grid step.
# ---------------------------------------------------------------------------
def _channel_gate_kernel(
    x_ref,        # (1, C, HW)   VMEM
    w1_ref,       # (Hd, C)      VMEM   first Linear weight (out, in)
    b1_ref,       # (Hd, 1)      VMEM
    w2_ref,       # (C, Hd)      VMEM   second Linear weight (out, in)
    b2_ref,       # (C, 1)       VMEM
    o_ref,        # (1, C, HW)   VMEM
    *, inv_hw,
):
    # ---- global pooling over the spatial (lane) axis -> (C, 1) each ----
    xf = x_ref[0].astype(jnp.float32)                       # (C, HW)
    avg = jnp.sum(xf, axis=-1, keepdims=True) * inv_hw      # (C, 1)
    mx = jnp.max(xf, axis=-1, keepdims=True)                # (C, 1)
    # (xf's last use is here; it is not kept live across the rest of the kernel)

    w1 = w1_ref[...].astype(jnp.float32)                    # (Hd, C)
    b1 = b1_ref[...].astype(jnp.float32)                    # (Hd, 1)
    w2 = w2_ref[...].astype(jnp.float32)                    # (C, Hd)
    b2 = b2_ref[...].astype(jnp.float32)                    # (C, 1)

    def mlp(p):                                             # p: (C, 1)
        a = jnp.maximum(
            jnp.dot(w1, p, preferred_element_type=jnp.float32) + b1, 0.0)
        return jnp.dot(w2, a, preferred_element_type=jnp.float32) + b2

    att = mlp(avg) + mlp(mx)                                # (C, 1)
    scale = 1.0 / (1.0 + jnp.exp(-att))                     # sigmoid, (C, 1)

    # ---- gating multiply: re-read x from the VMEM ref (no big live value) ----
    o_ref[0] = (x_ref[0].astype(jnp.float32) * scale).astype(o_ref.dtype)


# ---------------------------------------------------------------------------
# Wrapper
# ---------------------------------------------------------------------------
def channel_gate(x, params):
    N, C, H, W = x.shape
    hw = H * W
    hidden = params["w1"].shape[0]

    x2 = x.reshape(N, C, hw)                  # lane-dense trailing dim
    b1 = params["b1"].reshape(hidden, 1)
    b2 = params["b2"].reshape(C, 1)

    kernel = functools.partial(_channel_gate_kernel, inv_hw=1.0 / float(hw))

    out = pl.pallas_call(
        kernel,
        out_shape=jax.ShapeDtypeStruct((N, C, hw), x.dtype),
        grid=(N,),
        in_specs=[
            pl.BlockSpec((1, C, hw), lambda n: (n, 0, 0)),
            pl.BlockSpec((hidden, C), lambda n: (0, 0)),
            pl.BlockSpec((hidden, 1), lambda n: (0, 0)),
            pl.BlockSpec((C, hidden), lambda n: (0, 0)),
            pl.BlockSpec((C, 1), lambda n: (0, 0)),
        ],
        out_specs=pl.BlockSpec((1, C, hw), lambda n: (n, 0, 0)),
        compiler_params=pltpu.CompilerParams(
            dimension_semantics=("parallel",)),
    )(x2, params["w1"], b1, params["w2"], b2)

    return out.reshape(N, C, H, W)


# ---------------------------------------------------------------------------
# Parameter init (deterministic) + pure-JAX reference
# ---------------------------------------------------------------------------
def init_params(key, channel, reduction_ratio=16):
    hidden = max(channel // reduction_ratio, 1)
    k1, k2, k3, k4 = jax.random.split(key, 4)
    w1 = jax.random.normal(k1, (hidden, channel), jnp.float32) / np.sqrt(channel)
    b1 = 0.05 * jax.random.normal(k2, (hidden,), jnp.float32)
    w2 = jax.random.normal(k3, (channel, hidden), jnp.float32) / np.sqrt(hidden)
    b2 = 0.05 * jax.random.normal(k4, (channel,), jnp.float32)
    return {"w1": w1, "b1": b1, "w2": w2, "b2": b2}


def reference(x, params):
    avg = jnp.mean(x, axis=(2, 3))                               # (N, C)
    mx = jnp.max(x, axis=(2, 3))                                 # (N, C)

    def mlp(p):
        a = jax.nn.relu(p @ params["w1"].T + params["b1"])
        return a @ params["w2"].T + params["b2"]

    att = mlp(avg) + mlp(mx)
    scale = jax.nn.sigmoid(att)[:, :, None, None]
    return x * scale


if __name__ == "__main__":
    key = jax.random.PRNGKey(0)
    kx, kp = jax.random.split(key)

    # channel // reduction_ratio must be >= 1, so use C=64 (hidden=4).
    N, C, H, W = 2, 64, 16, 16
    x = jax.random.normal(kx, (N, C, H, W), jnp.float32)
    params = init_params(kp, C, reduction_ratio=16)

    out = jax.block_until_ready(channel_gate(x, params))
    ref = jax.block_until_ready(reference(x, params))
    np.testing.assert_allclose(np.asarray(out), np.asarray(ref),
                               rtol=1e-4, atol=1e-5)
    print("KERNEL_OK")
</pallas_src>

<mosaic_0001>
module attributes {stable_mosaic.version = 11 : i64} {
  func.func @_channel_gate_kernel(%arg0: i32, %arg1: memref<1x64x256xf32, #tpu.memory_space<vmem>>, %arg2: memref<4x64xf32, #tpu.memory_space<vmem>>, %arg3: memref<4x1xf32, #tpu.memory_space<vmem>>, %arg4: memref<64x4xf32, #tpu.memory_space<vmem>>, %arg5: memref<64x1xf32, #tpu.memory_space<vmem>>, %arg6: memref<1x64x256xf32, #tpu.memory_space<vmem>>) attributes {dimension_semantics = [#tpu.dimension_semantics<parallel>], iteration_bounds = array<i64: 2>, scalar_prefetch = 0 : i64, scratch_operands = 0 : i64, tpu.core_type = #tpu.core_type<tc>, window_params = [{transform_indices = @transform_0, window_bounds = array<i64: 1, 64, 256>}, {pipeline_mode = #tpu.pipeline_mode<synchronous>, transform_indices = @transform_1, window_bounds = array<i64: 4, 64>}, {pipeline_mode = #tpu.pipeline_mode<synchronous>, transform_indices = @transform_2, window_bounds = array<i64: 4, 1>}, {pipeline_mode = #tpu.pipeline_mode<synchronous>, transform_indices = @transform_3, window_bounds = array<i64: 64, 4>}, {pipeline_mode = #tpu.pipeline_mode<synchronous>, transform_indices = @transform_4, window_bounds = array<i64: 64, 1>}, {transform_indices = @transform_5, window_bounds = array<i64: 1, 64, 256>}]} {
    %c0 = arith.constant 0 : index
    %c0_0 = arith.constant 0 : index
    %c0_1 = arith.constant 0 : index
    %0 = vector.load %arg1[%c0, %c0_0, %c0_1] : memref<1x64x256xf32, #tpu.memory_space<vmem>>, vector<1x64x256xf32>
    %1 = vector.shape_cast %0 : vector<1x64x256xf32> to vector<64x256xf32>
    %cst = arith.constant dense<0.000000e+00> : vector<64xf32>
    %2 = vector.multi_reduction <add>, %1, %cst [1] : vector<64x256xf32> to vector<64xf32>
    %3 = vector.shape_cast %2 : vector<64xf32> to vector<64x1xf32>
    %cst_2 = arith.constant 3.906250e-03 : f32
    %4 = vector.broadcast %cst_2 : f32 to vector<64x1xf32>
    %5 = arith.mulf %3, %4 : vector<64x1xf32>
    %cst_3 = arith.constant dense<0xFF800000> : vector<64xf32>
    %6 = vector.multi_reduction <maximumf>, %1, %cst_3 [1] : vector<64x256xf32> to vector<64xf32>
    %7 = vector.shape_cast %6 : vector<64xf32> to vector<64x1xf32>
    %c0_4 = arith.constant 0 : index
    %c0_5 = arith.constant 0 : index
    %8 = vector.load %arg2[%c0_4, %c0_5] : memref<4x64xf32, #tpu.memory_space<vmem>>, vector<4x64xf32>
    %c0_6 = arith.constant 0 : index
    %c0_7 = arith.constant 0 : index
    %9 = vector.load %arg3[%c0_6, %c0_7] : memref<4x1xf32, #tpu.memory_space<vmem>>, vector<4x1xf32>
    %c0_8 = arith.constant 0 : index
    %c0_9 = arith.constant 0 : index
    %10 = vector.load %arg4[%c0_8, %c0_9] : memref<64x4xf32, #tpu.memory_space<vmem>>, vector<64x4xf32>
    %c0_10 = arith.constant 0 : index
    %c0_11 = arith.constant 0 : index
    %11 = vector.load %arg5[%c0_10, %c0_11] : memref<64x1xf32, #tpu.memory_space<vmem>>, vector<64x1xf32>
    %cst_12 = arith.constant dense<0.000000e+00> : vector<4x1xf32>
    %12 = tpu.matmul %8, %5, %cst_12 {dimension_numbers = #tpu.dot_dimension_numbers<[1], [0], [0], [1], [0, 0, 1, 1], [], []>} : vector<4x64xf32>, vector<64x1xf32>, vector<4x1xf32> -> vector<4x1xf32>
    %13 = arith.addf %12, %9 : vector<4x1xf32>
    %cst_13 = arith.constant 0.000000e+00 : f32
    %14 = vector.broadcast %cst_13 : f32 to vector<4x1xf32>
    %15 = arith.maximumf %13, %14 : vector<4x1xf32>
    %cst_14 = arith.constant dense<0.000000e+00> : vector<64x1xf32>
    %16 = tpu.matmul %10, %15, %cst_14 {dimension_numbers = #tpu.dot_dimension_numbers<[1], [0], [0], [1], [0, 0, 1, 1], [], []>} : vector<64x4xf32>, vector<4x1xf32>, vector<64x1xf32> -> vector<64x1xf32>
    %17 = arith.addf %16, %11 : vector<64x1xf32>
    %cst_15 = arith.constant dense<0.000000e+00> : vector<4x1xf32>
    %18 = tpu.matmul %8, %7, %cst_15 {dimension_numbers = #tpu.dot_dimension_numbers<[1], [0], [0], [1], [0, 0, 1, 1], [], []>} : vector<4x64xf32>, vector<64x1xf32>, vector<4x1xf32> -> vector<4x1xf32>
    %19 = arith.addf %18, %9 : vector<4x1xf32>
    %cst_16 = arith.constant 0.000000e+00 : f32
    %20 = vector.broadcast %cst_16 : f32 to vector<4x1xf32>
    %21 = arith.maximumf %19, %20 : vector<4x1xf32>
    %cst_17 = arith.constant dense<0.000000e+00> : vector<64x1xf32>
    %22 = tpu.matmul %10, %21, %cst_17 {dimension_numbers = #tpu.dot_dimension_numbers<[1], [0], [0], [1], [0, 0, 1, 1], [], []>} : vector<64x4xf32>, vector<4x1xf32>, vector<64x1xf32> -> vector<64x1xf32>
    %23 = arith.addf %22, %11 : vector<64x1xf32>
    %24 = arith.addf %17, %23 : vector<64x1xf32>
    %cst_18 = arith.constant 0.000000e+00 : f32
    %25 = vector.broadcast %cst_18 : f32 to vector<64x1xf32>
    %26 = arith.subf %25, %24 : vector<64x1xf32>
    %27 = math.exp %26 : vector<64x1xf32>
    %cst_19 = arith.constant 1.000000e+00 : f32
    %28 = vector.broadcast %cst_19 : f32 to vector<64x1xf32>
    %29 = arith.addf %28, %27 : vector<64x1xf32>
    %cst_20 = arith.constant 1.000000e+00 : f32
    %30 = vector.broadcast %cst_20 : f32 to vector<64x1xf32>
    %31 = arith.divf %30, %29 : vector<64x1xf32>
    %c0_21 = arith.constant 0 : index
    %c0_22 = arith.constant 0 : index
    %c0_23 = arith.constant 0 : index
    %32 = vector.load %arg1[%c0_21, %c0_22, %c0_23] : memref<1x64x256xf32, #tpu.memory_space<vmem>>, vector<1x64x256xf32>
    %33 = vector.shape_cast %32 : vector<1x64x256xf32> to vector<64x256xf32>
    %34 = vector.broadcast %31 : vector<64x1xf32> to vector<64x256xf32>
    %35 = arith.mulf %33, %34 : vector<64x256xf32>
    %c0_24 = arith.constant 0 : index
    %c0_25 = arith.constant 0 : index
    %c0_26 = arith.constant 0 : index
    %36 = vector.load %arg6[%c0_24, %c0_25, %c0_26] : memref<1x64x256xf32, #tpu.memory_space<vmem>>, vector<1x64x256xf32>
    %37 = vector.shape_cast %36 : vector<1x64x256xf32> to vector<64x256xf32>
    %38 = vector.shape_cast %35 : vector<64x256xf32> to vector<1x64x256xf32>
    tpu.vector_store %arg6[%c0_24, %c0_25, %c0_26], %38 {strides = array<i32>} : memref<1x64x256xf32, #tpu.memory_space<vmem>>, vector<1x64x256xf32>,
    return
  }
  func.func @transform_0(%arg0: i32) -> (i32, i32, i32) {
    %c0_i32 = arith.constant 0 : i32
    %c0_i32_0 = arith.constant 0 : i32
    %c0_i32_1 = arith.constant 0 : i32
    return %arg0, %c0_i32, %c0_i32_0 : i32, i32, i32
  }
  func.func @transform_1(%arg0: i32) -> (i32, i32) {
    %c0_i32 = arith.constant 0 : i32
    %c0_i32_0 = arith.constant 0 : i32
    %c0_i32_1 = arith.constant 0 : i32
    return %c0_i32, %c0_i32_0 : i32, i32
  }
  func.func @transform_2(%arg0: i32) -> (i32, i32) {
    %c0_i32 = arith.constant 0 : i32
    %c0_i32_0 = arith.constant 0 : i32
    %c0_i32_1 = arith.constant 0 : i32
    return %c0_i32, %c0_i32_0 : i32, i32
  }
  func.func @transform_3(%arg0: i32) -> (i32, i32) {
    %c0_i32 = arith.constant 0 : i32
    %c0_i32_0 = arith.constant 0 : i32
    %c0_i32_1 = arith.constant 0 : i32
    return %c0_i32, %c0_i32_0 : i32, i32
  }
  func.func @transform_4(%arg0: i32) -> (i32, i32) {
    %c0_i32 = arith.constant 0 : i32
    %c0_i32_0 = arith.constant 0 : i32
    %c0_i32_1 = arith.constant 0 : i32
    return %c0_i32, %c0_i32_0 : i32, i32
  }
  func.func @transform_5(%arg0: i32) -> (i32, i32, i32) {
    %c0_i32 = arith.constant 0 : i32
    %c0_i32_0 = arith.constant 0 : i32
    %c0_i32_1 = arith.constant 0 : i32
    return %arg0, %c0_i32, %c0_i32_0 : i32, i32, i32
  }
}

</mosaic_0001>

<bundles_post_ra>
// kernel: tpu_custom_call.1
= control target key start
LH: loop header
LB: loop body
LE: loop exit
PB: predicated region body
PF: predicated region fallthrough
CT: control target
= control target key end

     0   :  { %10 = vsyncpa [#allocation3], 0  ;;  %s1705_s0 = inlined_call_operand.hbm [shape: f32[2,64,256], index: 0, kind: input, shape index: {}]   ;;  %s1706_s1 = inlined_call_operand.vmem [shape: f32[4,64], index: 1, kind: input, shape index: {}]   ;;  %s1707_s2 = inlined_call_operand.vmem [shape: f32[4,1], index: 2, kind: input, shape index: {}]   ;;  %s1708_s3 = inlined_call_operand.vmem [shape: f32[64,4], index: 3, kind: input, shape index: {}]   ;;  %s1709_s4 = inlined_call_operand.vmem [shape: f32[64,1], index: 4, kind: input, shape index: {}]   ;;  %s1710_s5 = inlined_call_operand.hbm [shape: f32[2,64,256], index: 5, kind: output, shape index: {}]  }
   0x1   :  { %12 = vsyncpa [#allocation3 + $0x1], 0 }
   0x2   :  { %13 = vsyncpa [#allocation4], 0 }
   0x3   :  { %15 = vsyncpa [#allocation4 + $0x1], 0  ;;  %s1350_s18 = smov 0   ;;  %s1352_s19 = smov 0  }
   0x4   :  { %s1354_s20 = smov 0   ;;  %s1356_s21 = smov 0  }
   0x5 LB: > { %s1371_s22 = sadd.s32 4294967295, %s1308_s21   ;;  %s936_s23 = sadd.s32 4294967294, %s1308_s21   ;;  %s1308_s21 = sphi %s1356_s21, %s1723_s21   ;;  %s1304_s20 = sphi %s1354_s20, %s1722_s20   ;;  %s1300_s19 = sphi %s1352_s19, %s1721_s19   ;;  %s1296_s18 = sphi %s1350_s18, %s1720_s18  }
   0x6   : > { %s1375_s24 = sadd.s32 1, %s1308_s21   ;;  %s28_s25 = sadd.s32 1, %s1304_s20 }
   0x7   : > { %s25_s26 = ssub.s32 %s1308_s21, %s1375_s24  ;;  %p35_p0 = scmp.ne.s32.totalorder %s1304_s20, %s1300_s19 }
   0x8   : > { %p26_p1 = scmp.eq.s32.totalorder %s25_s26, 0  ;;  %p36_p2 = scmp.eq.s32.totalorder %s1308_s21, 0 }
   0x9   : > { %p41_p3 = scmp.ne.s32.totalorder %s1300_s19, %s1296_s18  ;;  %p42_p4 = scmp.eq.s32.totalorder %s1371_s22, 0 }
   0xa   : > { %s1387_s27 = scalar_select %p26_p1, %s1304_s20, %s28_s25  }
   0xb   : > { %p1389_p5 = por %p36_p2, %p35_p0  ;;  %p1393_p6 = por %p42_p4, %p41_p3 }
   0xc   : > { %p149_p7 = scmp.eq.s32.totalorder %s1371_s22, 1  ;;  %p155_p8 = scmp.eq.s32.totalorder %s936_s23, 1 }
   0xd   : > { %p1136_p10 = scmp.lt.s32.totalorder %s1308_s21, 2  ;;  %s187_s7 = sand.u32 1, %s1304_s20  }
   0xe   : > { %p1400_p11 = por %p149_p7, %p35_p0  ;;  %p1404_p12 = por %p155_p8, %p41_p3 }
   0xf   : > { %s970_s8 = sshll.u32 %s1308_s21, 11  ;;  %s939_s9 = sshll.u32 %s187_s7, 7 }
  0x10   : > { %s1714_s30 = scalar_select %p1400_p11, 1, 0 }
  0x11   : > { %s1715_s6 = scalar_select %p1404_p12, 1, 0 }
  0x12   : > { %s1413_s12 = scalar_lea.hbm %s1705_s0, %s970_s8  ;;  %s191_s13 = scalar_lea.vmem [#allocation2], %s939_s9 }
  0x13   : > { %s198_s14 = sshll.u32 %s191_s13, 4  ;;  %p1417_p13 = pnand %p1136_p10, %p1389_p5  ;;  %s1421_s14 = int_to_ptr.vmem [resolvable:$true] %s198_s14 }
  0x14   : > { %s1423_s16 = scalar_lea.sflag [#allocation3], %s187_s7  ;;  %s1212_s17 = scalar_lea.hbm %s1413_s12, 2048 }
  0x15   : > { %p1213_p0 = scmp.ne.s32.totalorder %s1413_s12, %s1212_s17  ;;  %p1214_p1 = pneg %p1417_p13 }
  0x16   : > { %s1217_s26 = scalar_lea.hbm %s1705_s0, 4096  ;;  %p1218_p4 = scmp.lt.u32.totalorder %s1413_s12, %s1705_s0 }
  0x17   : > { %p1215_p2 = pnand %p1214_p1, %p1213_p0  ;;  %p1219_p5 = scmp.lt.u32.totalorder %s1217_s26, %s1212_s17 }
  0x18   : > { %p1221_p8 = scmp.lt.u32.totalorder %s1212_s17, %s1413_s12 }
  0x19   : > { %p1216_p3 = pneg %p1215_p2  ;;  %p1220_p7 = por %p1219_p5, %p1218_p4 }
  0x1b   : > { %p1222_p10 = por %p1221_p8, %p1220_p7 }
  0x1d   : > { %p1223_p9 = pnand %p1222_p10, %p1216_p3 }
  0x1f   : > { %1226 = shalt.err (!%p1223_p9)
}
  0x20   : > { %s1227_s7 = scalar_lea.vmem %s1421_s14, 2048  ;;  %s1310_s9 = smov [#allocation2]  }
  0x21   : > { %p1228_p0 = scmp.ne.s32.totalorder %s1421_s14, %s1227_s7  ;;  %s1232_s10 = sshll.u32 %s1310_s9, 4  ;;  %s1233_s10 = int_to_ptr.vmem [resolvable:$false] %s1232_s10 }
  0x22   : > { %s1234_s11 = scalar_lea.vmem %s1233_s10, 4096  ;;  %p1235_p11 = scmp.lt.s32.totalorder %s1421_s14, %s1233_s10 }
  0x23   : > { %p1230_p2 = pnand %p1228_p0, %p1214_p1  ;;  %p1236_p4 = scmp.lt.s32.totalorder %s1234_s11, %s1227_s7 }
  0x25   : > { %p1231_p12 = pneg %p1230_p2  ;;  %p1237_p5 = por %p1236_p4, %p1235_p11 }
  0x27   : > { %p1238_p7 = pnand %p1237_p5, %p1231_p12 }
  0x29   : > { %1241 = shalt.err (!%p1238_p7)
}
  0x2a   : > { %s1311_s13 = smov 256   ;;  %s1312_s17 = smov 16  }
  0x2b   : > { %1131 = dma.hbm_to_vmem [thread:$0]  (!%p1417_p13), %s1413_s12, 2048, %s1421_s14, %s1423_s16, %s1311_s13, %s1311_s13, %s1312_s17  }
  0x2c   : > { %p942_p9 = scmp.ge.s32.totalorder %s1308_s21, 1  ;;  %p206_p1 = scmp.lt.s32.totalorder %s1308_s21, 3 }
  0x2e   : > { %p207_p3 = pnand %p942_p9, %p206_p1 }
  0x2f   : > { %s1454_s23 = sand.u32 (!%p207_p3), 1, %s1300_s19  }
  0x30   : > { %210 = sbr.rel (%p207_p3) target bundleno = 1088 (0x440), region = 40  ;;  %s943_s25 = sshll.u32 (!%p207_p3), %s1454_s23, 7 }
  0x31   : > { %s213_s26 = scalar_lea.sflag (!%p207_p3), [#allocation3], %s1454_s23  ;;  %s216_s28 = scalar_lea.vmem (!%p207_p3), [#allocation2], %s943_s25 }
  0x37   : > { %1287 = dma.done.wait (%p1393_p6), %s213_s26, 2048  }
  0x38   : > { %1289 = vsyncadd (%p1393_p6), %s213_s26, 4294965248  ;;  %v1464_v0 = vld [vmem:[%s216_s28 + $0x20] sm:$0xff]  ;;  %v1466_v1 = vld [vmem:[%s216_s28 + $0x28] sm:$0xff]  ;;  %v1313_v24 = vmov 0.0|0.0   ;;  %vm1314_vm0 = vmmov 0   ;;  %v1315_v25 = vmov 0.0  }
  0x39   : > { %v1468_v2 = vld [vmem:[%s216_s28] sm:$0xff]  ;;  %v265_v3 = vadd.f32 %v1466_v1, %v1464_v0  ;;  %v1472_v4 = vld [vmem:[%s216_s28 + $0x8] sm:$0xff]  ;;  %v1474_v5 = vld [vmem:[%s216_s28 + $0x30] sm:$0xff]  ;;  %1074 = vmatprep.subr.bf16.mxu0 %v1313_v24  ;;  %1024 = vmatprep.mubr.msk.f32.mxu0 %vm1314_vm0, %v1315_v25  ;;  %v297_v29 = vmax.f32 %v1464_v0, %v1466_v1  ;;  %vm333_vm1 = vcmask 523264   ;;  %vm408_vm2 = vcmask 31744   ;;  %s1622_s10 = scalar_lea.vmem [#allocation5], %s943_s25 }
  0x3a   : > { %v1476_v6 = vld [vmem:[%s216_s28 + $0x38] sm:$0xff]  ;;  %v259_v7 = vadd.f32 %v1472_v4, %v1468_v2  ;;  %v1480_v8 = vld [vmem:[%s216_s28 + $0x10] sm:$0xff]  ;;  %v1492_v14 = vld [vmem:[%s216_s28 + $0x40] sm:$0xff]  ;;  %v291_v27 = vmax.f32 %v1468_v2, %v1472_v4  ;;  %vm433_vm3 = vcmask 1043456   ;;  %s971_s25 = sshll.u32 %s1371_s22, 11  ;;  %s863_s11 = sshll.u32 %s1622_s10, 4  ;;  %s1657_s11 = int_to_ptr.vmem [resolvable:$true] %s863_s11 }
  0x3b   : > { %v1482_v9 = vld [vmem:[%s216_s28 + $0x18] sm:$0xff]  ;;  %266 = vadd.xlane.f32.xlu1 %v265_v3  ;;  %v268_v10 = vadd.f32 %v1476_v6, %v1474_v5  ;;  %v1488_v12 = vld [vmem:[%s216_s28 + $0x50] sm:$0xff]  ;;  %v1494_v15 = vld [vmem:[%s216_s28 + $0x48] sm:$0xff]  ;;  %v300_v28 = vmax.f32 %v1474_v5, %v1476_v6  ;;  %s1655_s26 = scalar_lea.hbm %s1710_s5, %s971_s25  ;;  %s850_s22 = scalar_lea.sflag [#allocation4], %s1454_s23 }
  0x3c   : > { %260 = vadd.xlane.f32.xlu0 %v259_v7  ;;  %v262_v11 = vadd.f32 %v1482_v9, %v1480_v8  ;;  %v1490_v13 = vld [vmem:[%s216_s28 + $0x58] sm:$0xff]  ;;  %v271_v17 = vadd.f32 %v1494_v15, %v1492_v14  ;;  %v1500_v18 = vld [vmem:[%s216_s28 + $0x70] sm:$0xff]  ;;  %v1504_v20 = vld [vmem:[%s216_s28 + $0x60] sm:$0xff]  ;;  %v294_v26 = vmax.f32 %v1480_v8, %v1482_v9  ;;  %v303_v31 = vmax.f32 %v1492_v14, %v1494_v15  ;;  %p1717_p11 = scmp.ne.s32.totalorder %s1714_s30, 0  ;;  %s1317_s29 = smov [#allocation5]  }
  0x3d   : > { %v274_v16 = vadd.f32 %v1490_v13, %v1488_v12  ;;  %v1502_v19 = vld [vmem:[%s216_s28 + $0x78] sm:$0xff]  ;;  %v1506_v21 = vld [vmem:[%s216_s28 + $0x68] sm:$0xff]  ;;  %v306_v30 = vmax.f32 %v1488_v12, %v1490_v13  ;;  %v315_v54 = vld [vmem:[%s1706_s1] sm:$0xf]  ;;  %s1242_s28 = scalar_lea.vmem %s1657_s11, 2048  ;;  %s1246_s12 = sshll.u32 %s1317_s29, 4  ;;  %s1247_s12 = int_to_ptr.vmem [resolvable:$false] %s1246_s12 }
  0x3e   : > { %v280_v22 = vadd.f32 %v1502_v19, %v1500_v18  ;;  %v277_v23 = vadd.f32 %v1506_v21, %v1504_v20  ;;  %v312_v32 = vmax.f32 %v1500_v18, %v1502_v19  ;;  %v309_v33 = vmax.f32 %v1504_v20, %v1506_v21  ;;  %v317_v55 = vld [vmem:[%s1708_s3] sm:$0xff]  ;;  %p1243_p6 = scmp.ne.s32.totalorder %s1657_s11, %s1242_s28  ;;  %s1248_s14 = scalar_lea.vmem %s1247_s12, 4096 }
  0x3f   : > { %269 = vadd.xlane.f32.xlu1 %v268_v10  ;;  %1029 = vmatprep.mubr.msk.f32.mxu1 %vm408_vm2, %v317_v55  ;;  %v316_v58 = vld [vmem:[%s1707_s2] sm:$0xf]  ;;  %v318_v10 = vld [vmem:[%s1708_s3 + $0x8] sm:$0xff]  ;;  %p1249_p8 = scmp.lt.s32.totalorder %s1657_s11, %s1247_s12  ;;  %p1250_p10 = scmp.lt.s32.totalorder %s1248_s14, %s1242_s28 }
  0x40   : > { %263 = vadd.xlane.f32.xlu0 %v262_v11  ;;  %v319_v11 = vld [vmem:[%s1708_s3 + $0x10] sm:$0xff]  ;;  %p1244_p12 = pnand %p1243_p6, %p1717_p11 }
  0x41   : > { %p1251_p0 = por %p1250_p10, %p1249_p8 }
  0x42   : > { %p1245_p13 = pneg %p1244_p12 }
  0x43   : > { %275 = vadd.xlane.f32.xlu1 %v274_v16 }
  0x44   : > { %272 = vadd.xlane.f32.xlu0 %v271_v17  ;;  %p1252_p2 = pnand %p1251_p0, %p1245_p13 }
  0x47   : > { %281 = vadd.xlane.f32.xlu1 %v280_v22 }
  0x48   : > { %278 = vadd.xlane.f32.xlu0 %v277_v23  ;;  %v320_v23 = vld [vmem:[%s1708_s3 + $0x18] sm:$0xff] }
  0x4b   : > { %295 = vmax.xlane.f32.xlu1 %v294_v26  ;;  %v321_v26 = vld [vmem:[%s1708_s3 + $0x20] sm:$0xff] }
  0x4c   : > { %292 = vmax.xlane.f32.xlu0 %v291_v27 }
  0x4f   : > { %301 = vmax.xlane.f32.xlu1 %v300_v28  ;;  %v322_v28 = vld [vmem:[%s1708_s3 + $0x28] sm:$0xff] }
  0x50   : > { %298 = vmax.xlane.f32.xlu0 %v297_v29 }
  0x53   : > { %307 = vmax.xlane.f32.xlu1 %v306_v30 }
  0x54   : > { %304 = vmax.xlane.f32.xlu0 %v303_v31  ;;  %v323_v31 = vld [vmem:[%s1708_s3 + $0x30] sm:$0xff] }
  0x57   : > { %313 = vmax.xlane.f32.xlu1 %v312_v32 }
  0x58   : > { %310 = vmax.xlane.f32.xlu0 %v309_v33  ;;  %v324_v33 = vld [vmem:[%s1708_s3 + $0x38] sm:$0xff] }
  0xc8   : > { %v267_v34 = vpop.xlane.xlu1 %266 }
  0xc9   : > { %v261_v35 = vpop.xlane.xlu0 %260  ;;  %v285_v40 = vmul.f32 0.00390625, %v267_v34 }
  0xca   : > { %v283_v38 = vmul.f32 0.00390625, %v261_v35 }
  0xcc   : > { %v270_v36 = vpop.xlane.xlu1 %269 }
  0xcd   : > { %v264_v37 = vpop.xlane.xlu0 %263  ;;  %v286_v41 = vmul.f32 0.00390625, %v270_v36 }
  0xce   : > { %v284_v39 = vmul.f32 0.00390625, %v264_v37 }
  0xcf   : > { %v1078_v47 = vpack.c.bf16 %v286_v41, %v285_v40 }
  0xd0   : > { %v1075_v42 = vpack.c.bf16 %v284_v39, %v283_v38  ;;  %v276_v43 = vpop.xlane.xlu1 %275 }
  0xd1   : > { %v273_v44 = vpop.xlane.xlu0 %272  ;;  %v288_v45 = vmul.f32 0.00390625, %v276_v43  ;;  %v330_v43 = vld [vmem:[%s1709_s4 + $0x28] sm:$0xff] }
  0xd2   : > { %1076 = vmatpush3.bf16.msra.mxu0 %v1075_v42  ;;  %v287_v46 = vmul.f32 0.00390625, %v273_v44  ;;  %v325_v42 = vld [vmem:[%s1709_s4] sm:$0xff] }
  0xd3   : > { %1077 = vmatprep.subr.bf16.mxu0 %v1313_v24 }
  0xd4   : > { %v282_v48 = vpop.xlane.xlu1 %281  ;;  %v1081_v50 = vpack.c.bf16 %v288_v45, %v287_v46  ;;  %v329_v45 = vld [vmem:[%s1709_s4 + $0x20] sm:$0xff] }
  0xd5   : > { %v279_v49 = vpop.xlane.xlu0 %278  ;;  %v290_v51 = vmul.f32 0.00390625, %v282_v48  ;;  %v327_v48 = vld [vmem:[%s1709_s4 + $0x10] sm:$0xff] }
  0xd6   : > { %1079 = vmatpush3.bf16.msra.mxu0 %v1078_v47  ;;  %v289_v52 = vmul.f32 0.00390625, %v279_v49  ;;  %v328_v47 = vld [vmem:[%s1709_s4 + $0x18] sm:$0xff]  ;;  %v1112_v49 = vadd.f32 %v330_v43, %v330_v43 }
  0xd7   : > { %1080 = vmatprep.subr.bf16.mxu0 %v1313_v24 }
  0xd8   : > { %v1084_v53 = vpack.c.bf16 %v290_v51, %v289_v52  ;;  %v296_v56 = vpop.xlane.xlu1 %295  ;;  %v1106_v52 = vadd.f32 %v328_v47, %v328_v47 }
  0xd9   : > { %v293_v57 = vpop.xlane.xlu0 %292 }
  0xda   : > { %1082 = vmatpush3.bf16.msra.mxu0 %v1081_v50  ;;  %v1087_v7 = vpack.c.bf16 %v296_v56, %v293_v57  ;;  %v1114_v50 = vadd.f32 %v329_v45, %v329_v45 }
  0xdb   : > { %1083 = vmatprep.subr.bf16.mxu0 %v1313_v24 }
  0xdc   : > { %v302_v60 = vpop.xlane.xlu1 %301 }
  0xdd   : > { %v299_v63 = vpop.xlane.xlu0 %298 }
  0xde   : > { %1085 = vmatpush3.bf16.msra.mxu0 %v1084_v53  ;;  %v1090_v22 = vpack.c.bf16 %v302_v60, %v299_v63 }
  0xe0   : > { %v308_v16 = vpop.xlane.xlu1 %307 }
  0xe1   : > { %1025 = vmatmul.mubr.msk.f32.vlgmr.msra.gmra.mrb[0].mxu0 %vm333_vm1, %v315_v54  ;;  %v305_v17 = vpop.xlane.xlu0 %304 }
  0xe2   : > { %1062 = vmatprep.mubr.msk.f32.mxu0 %vm408_vm2, %v317_v55  ;;  %v1093_v27 = vpack.c.bf16 %v308_v16, %v305_v17 }
  0xe4   : > { %v314_v29 = vpop.xlane.xlu1 %313 }
  0xe5   : > { %v311_v30 = vpop.xlane.xlu0 %310 }
  0xe6   : > { %v1096_v32 = vpack.c.bf16 %v314_v29, %v311_v30 }
 0x1b4   : > { %v403_v59 = vpop.f32.mrb[0].mxu0 }
 0x1b5   : > { %v404_v61 = vadd.f32 %v403_v59, %v316_v58  ;;  %v1026_v62 = vpop.f32.mrb[1].mxu0 }
 0x1b7   : > { %v407_v3 = vmax.f32 %v404_v61, 0.0 }
 0x1b9   : > { %1027 = vmatprep.subr.msk.mxu1 %vm433_vm3, %v407_v3 }
 0x1ba   : > { %1028 = vmatpush3.msk.msra.mxu1 %vm433_vm3, %v407_v3 }
 0x1bb   : > { %1030 = vmatmul.mubr.msk.f32.vlgmr.msra.gmra.mrb[0].mxu1 %vm408_vm2, %v318_v10  ;;  %1086 = vmatprep.subr.bf16.mxu1 %v1313_v24 }
 0x1bc   : > { %1088 = vmatpush3.bf16.msra.mxu1 %v1087_v7  ;;  %1032 = vmatprep.mubr.msk.f32.mxu1 %vm408_vm2, %v319_v11 }
 0x1bd   : > { %1089 = vmatprep.subr.bf16.mxu1 %v1313_v24 }
 0x1bf   : > { %1033 = vmatmul.mubr.msk.f32.gmra.mrb[2].mxu1 %vm408_vm2, %v320_v23 }
 0x1c0   : > { %1091 = vmatpush3.bf16.msra.mxu1 %v1090_v22  ;;  %1035 = vmatprep.mubr.msk.f32.mxu1 %vm408_vm2, %v321_v26 }
 0x1c1   : > { %1092 = vmatprep.subr.bf16.mxu1 %v1313_v24 }
 0x1c3   : > { %1036 = vmatmul.mubr.msk.f32.gmra.mrb[4].mxu1 %vm408_vm2, %v322_v28 }
 0x1c4   : > { %1094 = vmatpush3.bf16.msra.mxu1 %v1093_v27  ;;  %1038 = vmatprep.mubr.msk.f32.mxu1 %vm408_vm2, %v323_v31 }
 0x1c5   : > { %1095 = vmatprep.subr.bf16.mxu1 %v1313_v24  ;;  %v1316_v24 = vmov 0  }
 0x1c6   : > { %1179 = vset.pattern.permute.xlu1 %v1316_v24  ;;  %1178 = vset.pattern.permute.xlu0 %v1316_v24 }
 0x1c7   : > { %1039 = vmatmul.mubr.msk.f32.gmra.mrb[6].mxu1 %vm408_vm2, %v324_v33 }
 0x1c8   : > { %1097 = vmatpush3.bf16.msra.mxu1 %v1096_v32  ;;  %1057 = vmatprep.mubr.msk.f32.mxu1 %vm1314_vm0, %v1315_v25  ;;  %v326_v25 = vld [vmem:[%s1709_s4 + $0x8] sm:$0xff] }
 0x1c9   : > { %v1100_v44 = vadd.f32 %v326_v25, %v326_v25 }
 0x1cb   : > { %1058 = vmatmul.mubr.msk.f32.vlgmr.msra.gmra.mrb[8].mxu1 %vm333_vm1, %v315_v54 }
 0x1cc   : > { %1068 = vmatprep.mubr.msk.f32.mxu1 %vm408_vm2, %v321_v26 }
 0x28e   : > { %v1031_v34 = vpop.f32.mrb[0].mxu1 }
 0x28f   : > { %v503_v35 = vpop.f32.mrb[1].mxu1  ;;  %v1101_v51 = vadd.f32 %v1100_v44, %v1031_v34 }
 0x290   : > { %v504_v46 = vadd.f32 %v503_v35, %v325_v42  ;;  %v332_v35 = vld [vmem:[%s1709_s4 + $0x38] sm:$0xff] }
 0x292   : > { %v1034_v36 = vpop.f32.mrb[2].mxu1  ;;  %v1104_v56 = vadd.f32 %v504_v46, %v325_v42 }
 0x293   : > { %v513_v37 = vpop.f32.mrb[3].mxu1  ;;  %v1107_v63 = vadd.f32 %v1106_v52, %v1034_v36 }
 0x294   : > { %v514_v53 = vadd.f32 %v513_v37, %v327_v48  ;;  %v1116_v37 = vadd.f32 %v332_v35, %v332_v35 }
 0x296   : > { %v1110_v22 = vadd.f32 %v514_v53, %v327_v48 }
 0x29e   : > { %v608_v38 = vpop.f32.mrb[8].mxu1 }
 0x29f   : > { %v609_v39 = vadd.f32 %v608_v38, %v316_v58  ;;  %v1059_v40 = vpop.f32.mrb[9].mxu1 }
 0x2a1   : > { %v612_v41 = vmax.f32 %v609_v39, 0.0 }
 0x2a3   : > { %1060 = vmatprep.subr.msk.mxu0 %vm433_vm3, %v612_v41  ;;  %1098 = vmatprep.subr.msk.mxu1 %vm433_vm3, %v612_v41 }
 0x2a4   : > { %1061 = vmatpush3.msk.msra.mxu0 %vm433_vm3, %v612_v41  ;;  %1099 = vmatpush3.msk.msra.mxu1 %vm433_vm3, %v612_v41 }
 0x2a5   : > { %1063 = vmatmul.mubr.msk.f32.vlgmr.msra.gmra.mrb[2].mxu0 %vm408_vm2, %v318_v10  ;;  %1069 = vmatmul.mubr.msk.f32.vlgmr.msra.gmra.mrb[4].mxu1 %vm408_vm2, %v322_v28 }
 0x2a6   : > { %1065 = vmatprep.mubr.msk.f32.mxu0 %vm408_vm2, %v319_v11  ;;  %1071 = vmatprep.mubr.msk.f32.mxu1 %vm408_vm2, %v323_v31 }
 0x2a9   : > { %1066 = vmatmul.mubr.msk.f32.gmra.mrb[4].mxu0 %vm408_vm2, %v320_v23  ;;  %1072 = vmatmul.mubr.msk.f32.gmra.mrb[6].mxu1 %vm408_vm2, %v324_v33  ;;  %v331_v23 = vld [vmem:[%s1709_s4 + $0x30] sm:$0xff] }
 0x2aa   : > { %v1118_v36 = vadd.f32 %v331_v23, %v331_v23 }
 0x378   : > { %v1064_v54 = vpop.f32.mrb[2].mxu0  ;;  %v1070_v55 = vpop.f32.mrb[4].mxu1 }
 0x379   : > { %v1102_v57 = vadd.f32 %v1101_v51, %v1064_v54  ;;  %v1113_v58 = vadd.f32 %v1112_v49, %v1070_v55  ;;  %v682_v59 = vpop.f32.mrb[3].mxu0  ;;  %v702_v60 = vpop.f32.mrb[5].mxu1 }
 0x37a   : > { %v1105_v61 = vadd.f32 %v1104_v56, %v682_v59  ;;  %v1115_v62 = vadd.f32 %v1114_v50, %v702_v60 }
 0x37b   : > { %v730_v3 = vsub.f32 0.0, %v1102_v57  ;;  %v734_v7 = vsub.f32 0.0, %v1113_v58 }
 0x37c   : > { %v729_v10 = vsub.f32 0.0, %v1105_v61  ;;  %v733_v11 = vsub.f32 0.0, %v1115_v62  ;;  %v1067_v16 = vpop.f32.mrb[4].mxu0  ;;  %v1073_v17 = vpop.f32.mrb[6].mxu1 }
 0x37d   : > { %v739_v26 = vmul.f32 1.442695, %v730_v3  ;;  %v747_v27 = vmul.f32 1.442695, %v734_v7  ;;  %v1108_v28 = vadd.f32 %v1107_v63, %v1067_v16  ;;  %v692_v29 = vpop.f32.mrb[5].mxu0  ;;  %v712_v30 = vpop.f32.mrb[7].mxu1  ;;  %v1117_v41 = vadd.f32 %v1116_v37, %v1073_v17 }
 0x37e   : > { %v737_v31 = vmul.f32 1.442695, %v729_v10  ;;  %v1111_v32 = vadd.f32 %v1110_v22, %v692_v29  ;;  %v745_v33 = vmul.f32 1.442695, %v733_v11  ;;  %v1119_v40 = vadd.f32 %v1118_v36, %v712_v30 }
 0x37f   : > { %1180 = vpow2.f32 %v739_v26  ;;  %v732_v34 = vsub.f32 0.0, %v1108_v28  ;;  %v736_v46 = vsub.f32 0.0, %v1117_v41 }
 0x380   : > { %1182 = vpow2.f32 %v747_v27  ;;  %v731_v39 = vsub.f32 0.0, %v1111_v32  ;;  %v735_v25 = vsub.f32 0.0, %v1119_v40 }
 0x381   : > { %1184 = vpow2.f32 %v737_v31  ;;  %v743_v38 = vmul.f32 1.442695, %v732_v34  ;;  %v751_v51 = vmul.f32 1.442695, %v736_v46 }
 0x382   : > { %1186 = vpow2.f32 %v745_v33  ;;  %v741_v24 = vmul.f32 1.442695, %v731_v39  ;;  %v749_v47 = vmul.f32 1.442695, %v735_v25 }
 0x383   : > { %1188 = vpow2.f32 %v743_v38 }
 0x384   : > { %1190 = vpow2.f32 %v741_v24 }
 0x389   : > { %v1181_v42 = vpop.eup %1180 }
 0x38a   : > { %v1183_v43 = vpop.eup %1182  ;;  %v754_v44 = vadd.f32 1.0, %v1181_v42 }
 0x38b   : > { %v1185_v45 = vpop.eup %1184  ;;  %v758_v48 = vadd.f32 1.0, %v1183_v43 }
 0x38c   : > { %1192 = vrcp.f32 %v754_v44  ;;  %v753_v49 = vadd.f32 1.0, %v1185_v45  ;;  %v1187_v50 = vpop.eup %1186 }
 0x38d   : > { %v757_v52 = vadd.f32 1.0, %v1187_v50  ;;  %v1189_v53 = vpop.eup %1188 }
 0x38e   : > { %1194 = vrcp.f32 %v753_v49  ;;  %v756_v54 = vadd.f32 1.0, %v1189_v53  ;;  %v1191_v55 = vpop.eup %1190 }
 0x38f   : > { %1196 = vpow2.f32 %v749_v47  ;;  %v755_v58 = vadd.f32 1.0, %v1191_v55 }
 0x390   : > { %1198 = vrcp.f32 %v758_v48 }
 0x391   : > { %1200 = vpow2.f32 %v751_v51 }
 0x392   : > { %1202 = vrcp.f32 %v757_v52 }
 0x393   : > { %1204 = vrcp.f32 %v756_v54 }
 0x394   : > { %1206 = vrcp.f32 %v755_v58 }
 0x396   : > { %v1193_v56 = vpop.eup %1192 }
 0x397   : > { %784 = vperm.xlu1 %1179, %v1193_v56  }
 0x398   : > { %v1195_v57 = vpop.eup %1194 }
 0x399   : > { %v1197_v59 = vpop.eup %1196  ;;  %779 = vperm.xlu0 %1178, %v1195_v57  }
 0x39a   : > { %v1199_v60 = vpop.eup %1198  ;;  %v759_v61 = vadd.f32 1.0, %v1197_v59 }
 0x39b   : > { %804 = vperm.xlu1 %1179, %v1199_v60   ;;  %v1201_v62 = vpop.eup %1200 }
 0x39c   : > { %v1203_v63 = vpop.eup %1202  ;;  %v760_v3 = vadd.f32 1.0, %v1201_v62  ;;  %1208 = vrcp.f32 %v759_v61 }
 0x39d   : > { %v1205_v7 = vpop.eup %1204 }
 0x39e   : > { %1210 = vrcp.f32 %v760_v3  ;;  %v1207_v10 = vpop.eup %1206 }
 0x39f   : > { %799 = vperm.xlu1 %1179, %v1203_v63  }
 0x3a3   : > { %794 = vperm.xlu1 %1179, %v1205_v7  }
 0x3a6   : > { %v1209_v11 = vpop.eup %1208 }
 0x3a7   : > { %789 = vperm.xlu1 %1179, %v1207_v10  }
 0x3a8   : > { %v1211_v16 = vpop.eup %1210 }
 0x3ab   : > { %809 = vperm.xlu1 %1179, %v1209_v11  }
 0x3af   : > { %814 = vperm.xlu1 %1179, %v1211_v16  }
 0x416   : > { %v785_v17 = vpop.permute.xlu1 %784 }
 0x417   : > { %v819_v22 = vmul.f32 %v785_v17, %v1480_v8  ;;  %v820_v23 = vmul.f32 %v785_v17, %v1482_v9 }
 0x418   : > { %v780_v26 = vpop.permute.xlu0 %779 }
 0x419   : > { %835 = vst [vmem:[%s1622_s10 + $0x10] sm:$0xff] %v819_v22  ;;  %836 = vst [vmem:[%s1622_s10 + $0x18] sm:$0xff] %v820_v23  ;;  %v817_v27 = vmul.f32 %v780_v26, %v1468_v2  ;;  %v818_v8 = vmul.f32 %v780_v26, %v1472_v4 }
 0x41a   : > { %v805_v9 = vpop.permute.xlu1 %804 }
 0x41b   : > { %833 = vst [vmem:[%s1622_s10] sm:$0xff] %v817_v27  ;;  %834 = vst [vmem:[%s1622_s10 + $0x8] sm:$0xff] %v818_v8  ;;  %v827_v28 = vmul.f32 %v805_v9, %v1488_v12  ;;  %v828_v29 = vmul.f32 %v805_v9, %v1490_v13 }
 0x41d   : > { %843 = vst [vmem:[%s1622_s10 + $0x50] sm:$0xff] %v827_v28  ;;  %844 = vst [vmem:[%s1622_s10 + $0x58] sm:$0xff] %v828_v29 }
 0x41e   : > { %v800_v30 = vpop.permute.xlu1 %799 }
 0x41f   : > { %v825_v31 = vmul.f32 %v800_v30, %v1492_v14  ;;  %v826_v2 = vmul.f32 %v800_v30, %v1494_v15 }
 0x421   : > { %841 = vst [vmem:[%s1622_s10 + $0x40] sm:$0xff] %v825_v31  ;;  %842 = vst [vmem:[%s1622_s10 + $0x48] sm:$0xff] %v826_v2 }
 0x422   : > { %v795_v4 = vpop.permute.xlu1 %794 }
 0x423   : > { %v823_v12 = vmul.f32 %v795_v4, %v1474_v5  ;;  %v824_v13 = vmul.f32 %v795_v4, %v1476_v6 }
 0x425   : > { %839 = vst [vmem:[%s1622_s10 + $0x30] sm:$0xff] %v823_v12  ;;  %840 = vst [vmem:[%s1622_s10 + $0x38] sm:$0xff] %v824_v13 }
 0x426   : > { %v790_v32 = vpop.permute.xlu1 %789 }
 0x427   : > { %v821_v33 = vmul.f32 %v790_v32, %v1464_v0  ;;  %v822_v14 = vmul.f32 %v790_v32, %v1466_v1 }
 0x429   : > { %837 = vst [vmem:[%s1622_s10 + $0x20] sm:$0xff] %v821_v33  ;;  %838 = vst [vmem:[%s1622_s10 + $0x28] sm:$0xff] %v822_v14 }
 0x42a   : > { %v810_v15 = vpop.permute.xlu1 %809 }
 0x42b   : > { %v829_v34 = vmul.f32 %v810_v15, %v1504_v20  ;;  %v830_v5 = vmul.f32 %v810_v15, %v1506_v21 }
 0x42d   : > { %845 = vst [vmem:[%s1622_s10 + $0x60] sm:$0xff] %v829_v34  ;;  %846 = vst [vmem:[%s1622_s10 + $0x68] sm:$0xff] %v830_v5 }
 0x42e   : > { %v815_v6 = vpop.permute.xlu1 %814 }
 0x42f   : > { %v831_v0 = vmul.f32 %v815_v6, %v1500_v18  ;;  %v832_v1 = vmul.f32 %v815_v6, %v1502_v19 }
 0x431   : > { %847 = vst [vmem:[%s1622_s10 + $0x70] sm:$0xff] %v831_v0  ;;  %848 = vst [vmem:[%s1622_s10 + $0x78] sm:$0xff] %v832_v1 }
 0x432   : > { %1255 = shalt.err (!%p1252_p2)
}
 0x433   : > { %s1256_s15 = scalar_lea.hbm %s1655_s26, 2048  ;;  %s1260_s7 = scalar_lea.hbm %s1710_s5, 4096 }
 0x434   : > { %p1257_p4 = scmp.ne.s32.totalorder %s1655_s26, %s1256_s15  ;;  %p1261_p9 = scmp.lt.u32.totalorder %s1655_s26, %s1710_s5 }
 0x435   : > { %p1262_p1 = scmp.lt.u32.totalorder %s1260_s7, %s1256_s15  ;;  %p1264_p6 = scmp.lt.u32.totalorder %s1256_s15, %s1655_s26 }
 0x436   : > { %p1258_p5 = pnand %p1257_p4, %p1717_p11 }
 0x437   : > { %p1263_p3 = por %p1262_p1, %p1261_p9 }
 0x438   : > { %p1259_p7 = pneg %p1258_p5 }
 0x439   : > { %p1265_p12 = por %p1264_p6, %p1263_p3 }
 0x43b   : > { %p1266_p13 = pnand %p1265_p12, %p1259_p7 }
 0x43d   : > { %1269 = shalt.err (!%p1266_p13)
}
 0x43e   : > { %s1318_s25 = smov 256   ;;  %s1319_s13 = smov 16  }
 0x43f   : > { %1126 = dma.vmem_to_hbm [thread:$0]  (%p1717_p11), %s1657_s11, 2048, %s1655_s26, %s850_s22, %s1318_s25, %s1318_s25, %s1319_s13  }
 0x440 PF: > { %s878_s17 = sand.u32 1, %s1296_s18   ;;  %p1718_p8 = scmp.ne.s32.totalorder %s1715_s6, 0 }
 0x441   : > { %p1719_p10 = scmp.ge.s32.totalorder %s1308_s21, 2  ;;  %s879_s28 = scalar_lea.sflag [#allocation4], %s878_s17 }
 0x443   : > { %p1133_p0 = pnand %p1719_p10, %p1718_p8 }
 0x445   : > { %1291 = dma.done.wait (!%p1133_p0), %s879_s28, 2048  }
 0x446   : > { %1293 = vsyncadd (!%p1133_p0), %s879_s28, 4294965248  ;;  %p18_p2 = scmp.ge.s32.totalorder %s1375_s24, 4   ;;  %s1720_s18 = smov %s1300_s19 }
 0x447   : > { %s1721_s19 = smov %s1304_s20  ;;  %s1722_s20 = smov %s1387_s27 }
 0x448   : > { %s1723_s21 = smov %s1375_s24  ;;  %20 = sbr.rel (!%p18_p2) target bundleno = 5 (0x5), region = 85 }
 0x44f   :  { %884 = vsyncpa [#allocation3], 1 }
 0x450   :  { %886 = vsyncpa [#allocation3 + $0x1], 1 }
 0x451   :  { %887 = vsyncpa [#allocation4], 1 }
 0x452   :  { %889 = vsyncpa [#allocation4 + $0x1], 1 }

</bundles_post_ra>
